<compile_context>
chip_gen: v6e
topology: v6e:2x2x1
jax: 0.10.0
libtpu: 0.0.40
codegen_flags: <defaults>
</compile_context>

<pallas_src>
import jax
import jax.numpy as jnp
from jax import lax
from jax.experimental import pallas as pl
from jax.experimental.pallas import tpu as pltpu


def net_kernel(x_ref, w1T_ref, b1_ref, w23T_ref, b23_ref, o_ref):
    # x_ref: (TILE_B, 20) in the caller's dtype; widen in-register (no wrapper cast pass).
    x = x_ref[...].astype(jnp.float32)

    # fc1: Linear(20 -> 10) + ReLU, computed transposed so the batch stays on the lane axis:
    #   h = W1^T @ x^T  -> (10, TILE_B); contract dim 1 of both operands ("NT" matmul).
    h = lax.dot_general(
        w1T_ref[...], x,
        dimension_numbers=(((1,), (1,)), ((), ())),
        preferred_element_type=jnp.float32,
        precision=lax.Precision.HIGHEST,
    ) + b1_ref[...]
    h = jnp.maximum(h, 0.0)

    # Dropout(0.5): identity at inference time.

    # fc2·fc3 folded offline into a single Linear(10 -> 2).
    z = jnp.dot(
        w23T_ref[...], h,
        preferred_element_type=jnp.float32,
        precision=lax.Precision.HIGHEST,
    ) + b23_ref[...]                                   # (2, TILE_B)

    # 2-class softmax == sigmoid of the logit difference (exact, no cross-sublane reductions).
    d = z[1:2, :] - z[0:1, :]                          # logit(class1) - logit(class0)
    p1 = 1.0 / (1.0 + jnp.exp(-d))                     # P(class 1), (1, TILE_B)
    o_ref[0:1, :] = (1.0 - p1).astype(o_ref.dtype)
    o_ref[1:2, :] = p1.astype(o_ref.dtype)


def net_forward(x, params, *, tile_b=16384, lane_major_out=False):
    """Forward pass of `Net`.  x: (B, 20) any float dtype.  Returns (B, 2) f32 probabilities
    (or the lane-major (2, B) slab if lane_major_out=True, letting the caller fuse the T)."""
    w1, b1, w2, b2, w3, b3 = params
    hp = lax.Precision.HIGHEST

    # Fold fc2·fc3 offline (tiny matrices; exact under eval-mode dropout).
    w23 = jnp.dot(w2, w3, precision=hp)                # (10, 2)
    b23 = jnp.dot(b2, w3, precision=hp) + b3           # (1, 2)

    # Transposed, batch-on-lanes parameter layout (VMEM-resident, DMA'd once).
    w1T = w1.T                                         # (10, 20)
    b1c = b1.reshape(-1, 1)                            # (10, 1)
    w23T = w23.T                                       # (2, 10)
    b23c = b23.reshape(-1, 1)                          # (2, 1)

    assert x.ndim == 2 and x.shape[1] == 20
    B = x.shape[0]

    # Grid / tile sizing:
    #   * cap per-step tile at tile_b (kept a multiple of 128),
    #   * guarantee >=2 grid steps for mid/large batches so v7x can shard the parallel axis,
    #   * no host-side padding: ragged last block is handled by Pallas (clipped DMAs).
    n_steps = pl.cdiv(B, tile_b)
    if n_steps == 1 and B > 256:
        n_steps = 2
    tile = pl.cdiv(pl.cdiv(B, n_steps), 128) * 128
    grid_b = pl.cdiv(B, tile)

    # VMEM budget: x block lane-pads 20->128; output block sublane-pads 2->8; both double-buffered.
    itemsize = jnp.dtype(x.dtype).itemsize
    vmem_need = 2 * tile * 128 * itemsize + 2 * tile * 8 * 4 + (2 << 20)
    vmem_limit = int(max(32 << 20, vmem_need))

    out_t = pl.pallas_call(
        net_kernel,
        out_shape=jax.ShapeDtypeStruct((2, B), jnp.float32),
        grid=(grid_b,),
        in_specs=[
            pl.BlockSpec((tile, 20), lambda i: (i, 0)),   # x tile, contiguous slab, double-buffered
            pl.BlockSpec((10, 20), lambda i: (0, 0)),     # W1^T   (VMEM-resident)
            pl.BlockSpec((10, 1), lambda i: (0, 0)),      # b1
            pl.BlockSpec((2, 10), lambda i: (0, 0)),      # W23^T
            pl.BlockSpec((2, 1), lambda i: (0, 0)),       # b23
        ],
        out_specs=pl.BlockSpec((2, tile), lambda i: (0, i)),  # lane-dense output stores
        compiler_params=pltpu.CompilerParams(
            dimension_semantics=("parallel",),
            vmem_limit_bytes=vmem_limit,
        ),
    )(x, w1T, b1c, w23T, b23c)

    return out_t if lane_major_out else out_t.T        # (B, 2)


def init_params(key, num_units=10):
    # Deterministic synthetic init (shapes follow the PyTorch module's __init__),
    # stored as (in_features, out_features) / (1, out_features).
    k1, k2, k3, k4, k5, k6 = jax.random.split(key, 6)
    w1 = jax.random.normal(k1, (20, num_units), jnp.float32) * 0.1
    b1 = jax.random.normal(k2, (1, num_units), jnp.float32) * 0.1
    w2 = jax.random.normal(k3, (num_units, 10), jnp.float32) * 0.1
    b2 = jax.random.normal(k4, (1, 10), jnp.float32) * 0.1
    w3 = jax.random.normal(k5, (10, 2), jnp.float32) * 0.1
    b3 = jax.random.normal(k6, (1, 2), jnp.float32) * 0.1
    return (w1, b1, w2, b2, w3, b3)


def reference(x, params):
    # Un-fused forward in plain JAX at highest matmul precision (eval-mode dropout = identity).
    w1, b1, w2, b2, w3, b3 = params
    hp = lax.Precision.HIGHEST
    xf = x.astype(jnp.float32)
    h = jnp.maximum(jnp.dot(xf, w1, precision=hp) + b1, 0.0)
    h = jnp.dot(h, w2, precision=hp) + b2
    h = jnp.dot(h, w3, precision=hp) + b3
    return jax.nn.softmax(h, axis=-1)


if __name__ == "__main__":
    key = jax.random.PRNGKey(0)
    pkey, xkey1, xkey2 = jax.random.split(key, 3)
    params = init_params(pkey)

    # Small f32 batch (matches the module's expected input: (batch, 20)).
    x_small = jax.random.normal(xkey1, (8, 20), jnp.float32)
    out_small = jax.block_until_ready(net_forward(x_small, params))
    ref_small = reference(x_small, params)
    assert out_small.shape == (8, 2)
    assert jnp.allclose(jnp.sum(out_small, axis=-1), 1.0, atol=1e-5)
    assert jnp.allclose(out_small, ref_small, atol=2e-4, rtol=2e-4)

    # Ragged, non-multiple-of-128 batch in bf16 (exercises in-kernel cast + clipped last block).
    x_bf16 = jax.random.normal(xkey2, (200, 20), jnp.float32).astype(jnp.bfloat16)
    out_bf16 = jax.block_until_ready(net_forward(x_bf16, params))
    ref_bf16 = reference(x_bf16, params)
    assert out_bf16.shape == (200, 2)
    assert jnp.allclose(jnp.sum(out_bf16, axis=-1), 1.0, atol=1e-5)
    assert jnp.allclose(out_bf16, ref_bf16, atol=2e-4, rtol=2e-4)

    print("KERNEL_OK")
</pallas_src>

<mosaic_0001>
module attributes {stable_mosaic.version = 11 : i64} {
  func.func @net_kernel(%arg0: i32, %arg1: memref<128x20xf32, #tpu.memory_space<vmem>>, %arg2: memref<10x20xf32, #tpu.memory_space<vmem>>, %arg3: memref<10x1xf32, #tpu.memory_space<vmem>>, %arg4: memref<2x10xf32, #tpu.memory_space<vmem>>, %arg5: memref<2x1xf32, #tpu.memory_space<vmem>>, %arg6: memref<2x128xf32, #tpu.memory_space<vmem>>) attributes {dimension_semantics = [#tpu.dimension_semantics<parallel>], iteration_bounds = array<i64: 1>, scalar_prefetch = 0 : i64, scratch_operands = 0 : i64, tpu.core_type = #tpu.core_type<tc>, window_params = [{transform_indices = @transform_0, window_bounds = array<i64: 128, 20>}, {pipeline_mode = #tpu.pipeline_mode<synchronous>, transform_indices = @transform_1, window_bounds = array<i64: 10, 20>}, {pipeline_mode = #tpu.pipeline_mode<synchronous>, transform_indices = @transform_2, window_bounds = array<i64: 10, 1>}, {pipeline_mode = #tpu.pipeline_mode<synchronous>, transform_indices = @transform_3, window_bounds = array<i64: 2, 10>}, {pipeline_mode = #tpu.pipeline_mode<synchronous>, transform_indices = @transform_4, window_bounds = array<i64: 2, 1>}, {transform_indices = @transform_5, window_bounds = array<i64: 2, 128>}]} {
    %c0 = arith.constant 0 : index
    %c0_0 = arith.constant 0 : index
    %0 = vector.load %arg1[%c0, %c0_0] : memref<128x20xf32, #tpu.memory_space<vmem>>, vector<128x20xf32>
    %c0_1 = arith.constant 0 : index
    %c0_2 = arith.constant 0 : index
    %1 = vector.load %arg2[%c0_1, %c0_2] : memref<10x20xf32, #tpu.memory_space<vmem>>, vector<10x20xf32>
    %cst = arith.constant dense<0.000000e+00> : vector<10x128xf32>
    %2 = tpu.matmul %1, %0, %cst {dimension_numbers = #tpu.dot_dimension_numbers<[1], [1], [0], [0], [0, 0, 1, 0], [], []>, precision = #tpu.contract_precision<fp32>} : vector<10x20xf32>, vector<128x20xf32>, vector<10x128xf32> -> vector<10x128xf32>
    %c0_3 = arith.constant 0 : index
    %c0_4 = arith.constant 0 : index
    %3 = vector.load %arg3[%c0_3, %c0_4] : memref<10x1xf32, #tpu.memory_space<vmem>>, vector<10x1xf32>
    %4 = vector.broadcast %3 : vector<10x1xf32> to vector<10x128xf32>
    %5 = arith.addf %2, %4 : vector<10x128xf32>
    %cst_5 = arith.constant 0.000000e+00 : f32
    %6 = vector.broadcast %cst_5 : f32 to vector<10x128xf32>
    %7 = arith.maximumf %5, %6 : vector<10x128xf32>
    %c0_6 = arith.constant 0 : index
    %c0_7 = arith.constant 0 : index
    %8 = vector.load %arg4[%c0_6, %c0_7] : memref<2x10xf32, #tpu.memory_space<vmem>>, vector<2x10xf32>
    %cst_8 = arith.constant dense<0.000000e+00> : vector<2x128xf32>
    %9 = tpu.matmul %8, %7, %cst_8 {dimension_numbers = #tpu.dot_dimension_numbers<[1], [0], [0], [1], [0, 0, 1, 1], [], []>, precision = #tpu.contract_precision<fp32>} : vector<2x10xf32>, vector<10x128xf32>, vector<2x128xf32> -> vector<2x128xf32>
    %c0_9 = arith.constant 0 : index
    %c0_10 = arith.constant 0 : index
    %10 = vector.load %arg5[%c0_9, %c0_10] : memref<2x1xf32, #tpu.memory_space<vmem>>, vector<2x1xf32>
    %11 = vector.broadcast %10 : vector<2x1xf32> to vector<2x128xf32>
    %12 = arith.addf %9, %11 : vector<2x128xf32>
    %13 = vector.extract_strided_slice %12 {offsets = [1, 0], sizes = [1, 128], strides = [1, 1]} : vector<2x128xf32> to vector<1x128xf32>
    %14 = vector.extract_strided_slice %12 {offsets = [0, 0], sizes = [1, 128], strides = [1, 1]} : vector<2x128xf32> to vector<1x128xf32>
    %15 = arith.subf %13, %14 : vector<1x128xf32>
    %cst_11 = arith.constant 0.000000e+00 : f32
    %16 = vector.broadcast %cst_11 : f32 to vector<1x128xf32>
    %17 = arith.subf %16, %15 : vector<1x128xf32>
    %18 = math.exp %17 : vector<1x128xf32>
    %cst_12 = arith.constant 1.000000e+00 : f32
    %19 = vector.broadcast %cst_12 : f32 to vector<1x128xf32>
    %20 = arith.addf %19, %18 : vector<1x128xf32>
    %cst_13 = arith.constant 1.000000e+00 : f32
    %21 = vector.broadcast %cst_13 : f32 to vector<1x128xf32>
    %22 = arith.divf %21, %20 : vector<1x128xf32>
    %cst_14 = arith.constant 1.000000e+00 : f32
    %23 = vector.broadcast %cst_14 : f32 to vector<1x128xf32>
    %24 = arith.subf %23, %22 : vector<1x128xf32>
    %c0_15 = arith.constant 0 : index
    %c0_16 = arith.constant 0 : index
    %25 = vector.load %arg6[%c0_15, %c0_16] : memref<2x128xf32, #tpu.memory_space<vmem>>, vector<1x128xf32>
    tpu.vector_store %arg6[%c0_15, %c0_16], %24 {strides = array<i32>} : memref<2x128xf32, #tpu.memory_space<vmem>>, vector<1x128xf32>,
    %c1 = arith.constant 1 : index
    %c0_17 = arith.constant 0 : index
    %26 = vector.load %arg6[%c1, %c0_17] : memref<2x128xf32, #tpu.memory_space<vmem>>, vector<1x128xf32>
    tpu.vector_store %arg6[%c1, %c0_17], %22 {strides = array<i32>} : memref<2x128xf32, #tpu.memory_space<vmem>>, vector<1x128xf32>,
    return
  }
  func.func @transform_0(%arg0: i32) -> (i32, i32) {
    %c0_i32 = arith.constant 0 : i32
    %c0_i32_0 = arith.constant 0 : i32
    return %arg0, %c0_i32 : i32, i32
  }
  func.func @transform_1(%arg0: i32) -> (i32, i32) {
    %c0_i32 = arith.constant 0 : i32
    %c0_i32_0 = arith.constant 0 : i32
    %c0_i32_1 = arith.constant 0 : i32
    return %c0_i32, %c0_i32_0 : i32, i32
  }
  func.func @transform_2(%arg0: i32) -> (i32, i32) {
    %c0_i32 = arith.constant 0 : i32
    %c0_i32_0 = arith.constant 0 : i32
    %c0_i32_1 = arith.constant 0 : i32
    return %c0_i32, %c0_i32_0 : i32, i32
  }
  func.func @transform_3(%arg0: i32) -> (i32, i32) {
    %c0_i32 = arith.constant 0 : i32
    %c0_i32_0 = arith.constant 0 : i32
    %c0_i32_1 = arith.constant 0 : i32
    return %c0_i32, %c0_i32_0 : i32, i32
  }
  func.func @transform_4(%arg0: i32) -> (i32, i32) {
    %c0_i32 = arith.constant 0 : i32
    %c0_i32_0 = arith.constant 0 : i32
    %c0_i32_1 = arith.constant 0 : i32
    return %c0_i32, %c0_i32_0 : i32, i32
  }
  func.func @transform_5(%arg0: i32) -> (i32, i32) {
    %c0_i32 = arith.constant 0 : i32
    %c0_i32_0 = arith.constant 0 : i32
    return %c0_i32, %arg0 : i32, i32
  }
}

</mosaic_0001>

<bundles_post_ra>
// kernel: tpu_custom_call.1
= control target key start
LH: loop header
LB: loop body
LE: loop exit
PB: predicated region body
PF: predicated region fallthrough
CT: control target
= control target key end

     0   :  { %10 = vsyncpa [#allocation3], 0  ;;  %s2202_s0 = inlined_call_operand.hbm [shape: f32[8,20], index: 0, kind: input, shape index: {}]   ;;  %s2203_s1 = inlined_call_operand.vmem [shape: f32[10,20], index: 1, kind: input, shape index: {}]   ;;  %s2204_s2 = inlined_call_operand.vmem [shape: f32[10,1], index: 2, kind: input, shape index: {}]   ;;  %s2205_s3 = inlined_call_operand.vmem [shape: f32[2,10], index: 3, kind: input, shape index: {}]   ;;  %s2206_s4 = inlined_call_operand.vmem [shape: f32[2,1], index: 4, kind: input, shape index: {}]   ;;  %s2207_s5 = inlined_call_operand.hbm [shape: f32[2,8], index: 5, kind: output, shape index: {}]  }
   0x1   :  { %11 = vsyncpa [#allocation4], 0 }
   0x2   :  { %16 = vsyncadd [#allocation3], 1920  ;;  %s1743_s18 = smov [#allocation2]  }
   0x3   :  { %s17_s19 = sshll.u32 %s1743_s18, 4  ;;  %s18_s19 = int_to_ptr.vmem [resolvable:$true] %s17_s19 }
   0x4   :  { %s1707_s20 = scalar_lea.vmem %s18_s19, 128  ;;  %s1711_s21 = scalar_lea.vmem %s18_s19, 2048 }
   0x5   :  { %p1708_p0 = scmp.ne.s32.totalorder %s18_s19, %s1707_s20  ;;  %p1712_p1 = scmp.lt.s32.totalorder %s18_s19, %s18_s19 }
   0x6   :  { %p1713_p2 = scmp.lt.s32.totalorder %s1711_s21, %s1707_s20 }
   0x8   :  { %p1714_p3 = por %p1713_p2, %p1712_p1 }
   0xa   :  { %p1715_p4 = pnand %p1714_p3, %p1708_p0 }
   0xc   :  { %1718 = shalt.err (!%p1715_p4)
}
   0xd   :  { %s1744_s22 = smov 128   ;;  %s1745_s23 = smov 8  }
   0xe   :  { %23 = dma.hbm_to_vmem [thread:$0]  %s2202_s0, 128, %s18_s19, [#allocation3], %s1744_s22, %s1744_s22, %s1745_s23  }
   0xf   :  { %1739 = dma.done.wait [#allocation3], 2048  }
  0x10   :  { %1740 = vsyncadd [#allocation3], 4294965248  ;;  %vm65_vm0 = vcmask 162816   ;;  %v50_v0 = vld [vmem:[#allocation2 + $0x78] sm:$0xff]  ;;  %v49_v1 = vld [vmem:[#allocation2 + $0x70] sm:$0xff]  ;;  %vm1748_vm1 = vmmov 0  }
  0x11   :  { %v48_v2 = vld [vmem:[#allocation2 + $0x68] sm:$0xff]  ;;  %v118_v3 = vsel %vm65_vm0, %v50_v0, 0  ;;  %v115_v4 = vsel %vm65_vm0, %v49_v1, 0  ;;  %v47_v6 = vld [vmem:[#allocation2 + $0x60] sm:$0xff]  ;;  %v46_v7 = vld [vmem:[#allocation2 + $0x58] sm:$0xff]  ;;  %vm813_vm2 = vcmask 80896  }
  0x12   :  { %v112_v5 = vsel %vm65_vm0, %v48_v2, 0  ;;  %v1786_v8 = vand.u32 4294901760, %v118_v3  ;;  %v1788_v9 = vand.u32 4294901760, %v115_v4  ;;  %v109_v11 = vsel %vm65_vm0, %v47_v6, 0  ;;  %v45_v12 = vld [vmem:[#allocation2 + $0x50] sm:$0xff]  ;;  %v44_v24 = vld [vmem:[#allocation2 + $0x48] sm:$0xff] }
  0x13   :  { %v1790_v10 = vand.u32 4294901760, %v112_v5  ;;  %v1793_v13 = vand.u32 4294901760, %v109_v11  ;;  %v106_v14 = vsel %vm65_vm0, %v46_v7, 0  ;;  %v103_v19 = vsel %vm65_vm0, %v45_v12, 0  ;;  %v43_v34 = vld [vmem:[#allocation2 + $0x40] sm:$0xff]  ;;  %v42_v41 = vld [vmem:[#allocation2 + $0x38] sm:$0xff] }
  0x14   :  { %1434 = vmatprep.subr.mxu0 %v1786_v8  ;;  %v1798_v15 = vsub.f32 %v118_v3, %v1786_v8  ;;  %v1801_v16 = vsub.f32 %v115_v4, %v1788_v9  ;;  %v1807_v18 = vand.u32 4294901760, %v106_v14  ;;  %v1828_v27 = vand.u32 4294901760, %v103_v19  ;;  %v51_v48 = vld [vmem:[%s2203_s1] sm:$0xff]  ;;  %v41_v49 = vld [vmem:[#allocation2 + $0x30] sm:$0xff]  ;;  %v40_v57 = vld [vmem:[#allocation2 + $0x28] sm:$0xff] }
  0x15   :  { %v1804_v17 = vsub.f32 %v112_v5, %v1790_v10  ;;  %1435 = vmatpush3.xpose.msra.mxu0 %v1786_v8  ;;  %v1821_v23 = vsub.f32 %v109_v11, %v1793_v13  ;;  %v100_v28 = vsel %vm65_vm0, %v44_v24, 0  ;;  %v97_v40 = vsel %vm65_vm0, %v43_v34, 0  ;;  %v54_v63 = vld [vmem:[%s2204_s2 + $0x8] sm:$0x3]  ;;  %v39_v3 = vld [vmem:[#allocation2 + $0x20] sm:$0xff] }
  0x16   :  { %1436 = vmatprep.subr.mxu0 %v1788_v9  ;;  %v1812_v20 = vand.u32 4294901760, %v1798_v15  ;;  %v1815_v21 = vand.u32 4294901760, %v1801_v16  ;;  %v1832_v29 = vsub.f32 %v106_v14, %v1807_v18  ;;  %v1841_v35 = vand.u32 4294901760, %v100_v28  ;;  %v53_v14 = vld [vmem:[%s2204_s2] sm:$0xff] }
  0x17   :  { %v1818_v22 = vand.u32 4294901760, %v1804_v17  ;;  %v1838_v33 = vand.u32 4294901760, %v1821_v23  ;;  %v1844_v36 = vsub.f32 %v103_v19, %v1828_v27  ;;  %v1863_v46 = vand.u32 4294901760, %v97_v40 }
  0x18   :  { %v225_v25 = vsub.f32 %v1798_v15, %v1812_v20  ;;  %v232_v26 = vsub.f32 %v1801_v16, %v1815_v21  ;;  %v1850_v39 = vand.u32 4294901760, %v1832_v29  ;;  %v1858_v43 = vsub.f32 %v100_v28, %v1841_v35 }
  0x19   :  { %1437 = vmatpush3.xpose.msra.mxu0 %v1788_v9  ;;  %v239_v32 = vsub.f32 %v1804_v17, %v1818_v22  ;;  %v246_v38 = vsub.f32 %v1821_v23, %v1838_v33  ;;  %v1855_v42 = vand.u32 4294901760, %v1844_v36  ;;  %v94_v47 = vsel %vm65_vm0, %v42_v41, 0 }
  0x1a   :  { %1438 = vmatprep.subr.mxu0 %v1790_v10  ;;  %v226_v30 = vand.u32 4294901760, %v225_v25  ;;  %v233_v31 = vand.u32 4294901760, %v232_v26  ;;  %v253_v45 = vsub.f32 %v1832_v29, %v1850_v39  ;;  %v1872_v51 = vand.u32 4294901760, %v94_v47  ;;  %v38_v26 = vld [vmem:[#allocation2 + $0x18] sm:$0xff] }
  0x1b   :  { %v240_v37 = vand.u32 4294901760, %v239_v32  ;;  %v247_v44 = vand.u32 4294901760, %v246_v38  ;;  %v260_v50 = vsub.f32 %v1844_v36, %v1855_v42  ;;  %v1875_v52 = vand.u32 4294901760, %v1858_v43 }
  0x1c   :  { %1469 = vmatprep.subr.mxu1 %v226_v30  ;;  %v67_v53 = vsel %vm65_vm0, %v51_v48, 0  ;;  %v254_v54 = vand.u32 4294901760, %v253_v45  ;;  %v91_v55 = vsel %vm65_vm0, %v41_v49, 0  ;;  %v1881_v56 = vsub.f32 %v97_v40, %v1863_v46  ;;  %v37_v40 = vld [vmem:[#allocation2 + $0x10] sm:$0xff] }
  0x1d   :  { %1439 = vmatpush3.xpose.msra.mxu0 %v1790_v10  ;;  %1470 = vmatpush3.xpose.msra.mxu1 %v226_v30  ;;  %v1883_v58 = vand.u32 4294901760, %v67_v53  ;;  %v261_v60 = vand.u32 4294901760, %v260_v50  ;;  %v1890_v61 = vand.u32 4294901760, %v91_v55  ;;  %v88_v62 = vsel %vm65_vm0, %v40_v57, 0  ;;  %v36_v50 = vld [vmem:[#allocation2 + $0x8] sm:$0xff] }
  0x1e   :  { %1440 = vmatprep.subr.mxu0 %v1793_v13  ;;  %1471 = vmatprep.subr.mxu1 %v233_v31  ;;  %v267_v0 = vsub.f32 %v1858_v43, %v1875_v52  ;;  %v1900_v1 = vand.u32 4294901760, %v1881_v56  ;;  %v1903_v2 = vsub.f32 %v94_v47, %v1872_v51  ;;  %v1746_v5 = vmov 0  }
  0x1f   :  { %v1886_v59 = vsub.f32 %v67_v53, %v1883_v58  ;;  %1501 = vmatprep.mubr.f32.mxu1 %v1883_v58  ;;  %1693 = vset.pattern.permute.xlu0 %v1746_v5  ;;  %v1910_v7 = vand.u32 4294901760, %v88_v62  ;;  %v85_v11 = vsel %vm65_vm0, %v39_v3, 0  ;;  %v1914_v12 = vsub.f32 %v91_v55, %v1890_v61 }
  0x20   :  { %1694 = vset.pattern.permute.xlu1 %v1746_v5  ;;  %62 = vperm.xlu0 %1693, %v54_v63   ;;  %v268_v19 = vand.u32 4294901760, %v267_v0  ;;  %v274_v24 = vsub.f32 %v1881_v56, %v1900_v1  ;;  %v1923_v25 = vand.u32 4294901760, %v1903_v2  ;;  %v1926_v30 = vand.u32 4294901760, %v85_v11  ;;  %v35_v63 = vld [vmem:[#allocation2] sm:$0xff]  ;;  %v52_v0 = vld [vmem:[%s2203_s1 + $0x8] sm:$0x3] }
  0x21   :  { %1441 = vmatpush3.xpose.msra.mxu0 %v1793_v13  ;;  %1472 = vmatpush3.xpose.msra.mxu1 %v233_v31  ;;  %v203_v4 = vand.u32 4294901760, %v1886_v59  ;;  %v82_v31 = vsel %vm65_vm0, %v38_v26, 0  ;;  %v1936_v38 = vsub.f32 %v88_v62, %v1910_v7  ;;  %v73_v5 = vsel %vm65_vm0, %v35_v63, 0 }
  0x22   :  { %1442 = vmatprep.subr.mxu0 %v1807_v18  ;;  %1473 = vmatprep.subr.mxu1 %v240_v37  ;;  %v275_v32 = vand.u32 4294901760, %v274_v24  ;;  %v281_v34 = vsub.f32 %v1903_v2, %v1923_v25  ;;  %v1939_v41 = vand.u32 4294901760, %v82_v31  ;;  %v1949_v49 = vsub.f32 %v85_v11, %v1926_v30 }
  0x23   :  { %v204_v6 = vsub.f32 %v1886_v59, %v203_v4  ;;  %v1946_v48 = vand.u32 4294901760, %v1936_v38  ;;  %vm817_vm3 = vcmask 1041408  }
  0x24   :  { %57 = vperm.xlu0 %1693, %v53_v14   ;;  %v282_v45 = vand.u32 4294901760, %v281_v34  ;;  %v1962_v62 = vsub.f32 %v82_v31, %v1939_v41 }
  0x25   :  { %1443 = vmatpush3.xpose.msra.mxu0 %v1807_v18  ;;  %1474 = vmatpush3.xpose.msra.mxu1 %v240_v37  ;;  %v205_v28 = vand.u32 4294901760, %v204_v6  ;;  %v1933_v37 = vand.u32 4294901760, %v1914_v12  ;;  %v295_v57 = vsub.f32 %v1936_v38, %v1946_v48  ;;  %v70_v6 = vsel %vm65_vm0, %v52_v0, 0 }
  0x26   :  { %1444 = vmatprep.subr.mxu0 %v1828_v27  ;;  %1475 = vmatprep.subr.mxu1 %v247_v44  ;;  %v1981_v26 = vand.u32 4294901760, %v70_v6 }
  0x27   :  { %1466 = vmatprep.mubr.f32.mxu0 %v205_v28  ;;  %v288_v47 = vsub.f32 %v1914_v12, %v1933_v37  ;;  %v296_v11 = vand.u32 4294901760, %v295_v57  ;;  %v1984_v28 = vand.u32 4294901760, %v73_v5 }
  0x29   :  { %1445 = vmatpush3.xpose.msra.mxu0 %v1828_v27  ;;  %1476 = vmatpush3.xpose.msra.mxu1 %v247_v44  ;;  %v79_v44 = vsel %vm65_vm0, %v37_v40, 0  ;;  %v289_v55 = vand.u32 4294901760, %v288_v47 }
  0x2a   :  { %1446 = vmatprep.subr.mxu0 %v1841_v35  ;;  %1477 = vmatprep.subr.mxu1 %v254_v54  ;;  %v1952_v53 = vand.u32 4294901760, %v79_v44 }
  0x2c   :  { %v1979_v24 = vsub.f32 %v79_v44, %v1952_v53  ;;  %v1996_v44 = vsub.f32 %v70_v6, %v1981_v26 }
  0x2d   :  { %1447 = vmatpush3.xpose.msra.mxu0 %v1841_v35  ;;  %1478 = vmatpush3.xpose.msra.mxu1 %v254_v54  ;;  %v76_v54 = vsel %vm65_vm0, %v36_v50, 0 }
  0x2e   :  { %1448 = vmatprep.subr.mxu0 %v1863_v46  ;;  %1479 = vmatprep.subr.mxu1 %v261_v60  ;;  %v1968_v3 = vand.u32 4294901760, %v76_v54  ;;  %v1990_v34 = vand.u32 4294901760, %v1979_v24 }
  0x30   :  { %v1993_v40 = vsub.f32 %v76_v54, %v1968_v3  ;;  %v316_v47 = vsub.f32 %v1979_v24, %v1990_v34  ;;  %v213_v54 = vand.u32 4294901760, %v1996_v44 }
  0x31   :  { %1449 = vmatpush3.xpose.msra.mxu0 %v1863_v46  ;;  %1480 = vmatpush3.xpose.msra.mxu1 %v261_v60  ;;  %v1959_v60 = vand.u32 4294901760, %v1949_v49 }
  0x32   :  { %1450 = vmatprep.subr.mxu0 %v1872_v51  ;;  %1481 = vmatprep.subr.mxu1 %v268_v19  ;;  %v2003_v50 = vand.u32 4294901760, %v1993_v40  ;;  %v317_v57 = vand.u32 4294901760, %v316_v47 }
  0x33   :  { %v302_v14 = vsub.f32 %v1949_v49, %v1959_v60 }
  0x34   :  { %v323_v63 = vsub.f32 %v1993_v40, %v2003_v50 }
  0x35   :  { %1451 = vmatpush3.xpose.msra.mxu0 %v1872_v51  ;;  %1482 = vmatpush3.xpose.msra.mxu1 %v268_v19  ;;  %v1976_v19 = vand.u32 4294901760, %v1962_v62  ;;  %v303_v31 = vand.u32 4294901760, %v302_v14 }
  0x36   :  { %1452 = vmatprep.subr.mxu0 %v1890_v61  ;;  %1483 = vmatprep.subr.mxu1 %v275_v32  ;;  %v324_v6 = vand.u32 4294901760, %v323_v63 }
  0x39   :  { %1453 = vmatpush3.xpose.msra.mxu0 %v1890_v61  ;;  %1484 = vmatpush3.xpose.msra.mxu1 %v275_v32  ;;  %v309_v32 = vsub.f32 %v1962_v62, %v1976_v19 }
  0x3a   :  { %1454 = vmatprep.subr.mxu0 %v1910_v7  ;;  %1485 = vmatprep.subr.mxu1 %v282_v45 }
  0x3d   :  { %1455 = vmatpush3.xpose.msra.mxu0 %v1910_v7  ;;  %1486 = vmatpush3.xpose.msra.mxu1 %v282_v45  ;;  %v310_v45 = vand.u32 4294901760, %v309_v32 }
  0x3e   :  { %1456 = vmatprep.subr.mxu0 %v1926_v30  ;;  %1487 = vmatprep.subr.mxu1 %v289_v55 }
  0x41   :  { %1457 = vmatpush3.xpose.msra.mxu0 %v1926_v30  ;;  %1488 = vmatpush3.xpose.msra.mxu1 %v289_v55  ;;  %v2006_v55 = vsub.f32 %v73_v5, %v1984_v28  ;;  %v214_v5 = vsub.f32 %v1996_v44, %v213_v54 }
  0x42   :  { %1458 = vmatprep.subr.mxu0 %v1939_v41  ;;  %1489 = vmatprep.subr.mxu1 %v296_v11 }
  0x43   :  { %v2014_v0 = vand.u32 4294901760, %v2006_v55  ;;  %v215_v14 = vand.u32 4294901760, %v214_v5 }
  0x45   :  { %1459 = vmatpush3.xpose.msra.mxu0 %v1939_v41  ;;  %1490 = vmatpush3.xpose.msra.mxu1 %v296_v11  ;;  %v330_v11 = vsub.f32 %v2006_v55, %v2014_v0 }
  0x46   :  { %1460 = vmatprep.subr.mxu0 %v1952_v53  ;;  %1491 = vmatprep.subr.mxu1 %v303_v31 }
  0x49   :  { %1461 = vmatpush3.xpose.msra.mxu0 %v1952_v53  ;;  %1492 = vmatpush3.xpose.msra.mxu1 %v303_v31  ;;  %v331_v31 = vand.u32 4294901760, %v330_v11 }
  0x4a   :  { %1462 = vmatprep.subr.mxu0 %v1968_v3  ;;  %1493 = vmatprep.subr.mxu1 %v310_v45 }
  0x4d   :  { %1463 = vmatpush3.xpose.msra.mxu0 %v1968_v3  ;;  %1494 = vmatpush3.xpose.msra.mxu1 %v310_v45 }
  0x4e   :  { %1464 = vmatprep.subr.mxu0 %v1984_v28  ;;  %1495 = vmatprep.subr.mxu1 %v317_v57 }
  0x51   :  { %1465 = vmatpush3.xpose.msra.mxu0 %v1984_v28  ;;  %1496 = vmatpush3.xpose.msra.mxu1 %v317_v57 }
  0x52   :  { %1497 = vmatprep.subr.mxu1 %v324_v6  ;;  %1504 = vmatprep.subr.mxu0 %v1798_v15 }
  0x54   :  { %1467 = vmatmul.mubr.f32.vlgmr.msra.gmra.mxu0 %v215_v14 }
  0x55   :  { %1498 = vmatpush3.xpose.msra.mxu1 %v324_v6  ;;  %1505 = vmatpush3.xpose.msra.mxu0 %v1798_v15  ;;  %v806_v15 = vld [vmem:[%s2205_s3] sm:$0x3]  ;;  %s1749_s3 = smov [#allocation5]  }
  0x56   :  { %1499 = vmatprep.subr.mxu1 %v331_v31  ;;  %1506 = vmatprep.subr.mxu0 %v1801_v16 }
  0x57   :  { %1536 = vmatprep.mubr.f32.mxu0 %v1886_v59 }
  0x59   :  { %1500 = vmatpush3.xpose.msra.mxu1 %v331_v31  ;;  %1507 = vmatpush3.xpose.msra.mxu0 %v1801_v16 }
  0x5a   :  { %1508 = vmatprep.subr.mxu0 %v1804_v17  ;;  %1539 = vmatprep.subr.mxu1 %v1786_v8 }
  0x5c   :  { %1502 = vmatmul.mubr.f32.vlgmr.msra.gmra.mxu1 %v1981_v26 }
  0x5d   :  { %1509 = vmatpush3.xpose.msra.mxu0 %v1804_v17  ;;  %1540 = vmatpush3.xpose.msra.mxu1 %v1786_v8 }
  0x5e   :  { %1510 = vmatprep.subr.mxu0 %v1821_v23  ;;  %1541 = vmatprep.subr.mxu1 %v1788_v9 }
  0x5f   :  { %1571 = vmatprep.mubr.f32.mxu1 %v203_v4 }
  0x61   :  { %1511 = vmatpush3.xpose.msra.mxu0 %v1821_v23  ;;  %1542 = vmatpush3.xpose.msra.mxu1 %v1788_v9 }
  0x62   :  { %1512 = vmatprep.subr.mxu0 %v1832_v29  ;;  %1543 = vmatprep.subr.mxu1 %v1790_v10 }
  0x65   :  { %1513 = vmatpush3.xpose.msra.mxu0 %v1832_v29  ;;  %1544 = vmatpush3.xpose.msra.mxu1 %v1790_v10 }
  0x66   :  { %1514 = vmatprep.subr.mxu0 %v1844_v36  ;;  %1545 = vmatprep.subr.mxu1 %v1793_v13 }
  0x69   :  { %1515 = vmatpush3.xpose.msra.mxu0 %v1844_v36  ;;  %1546 = vmatpush3.xpose.msra.mxu1 %v1793_v13 }
  0x6a   :  { %1516 = vmatprep.subr.mxu0 %v1858_v43  ;;  %1547 = vmatprep.subr.mxu1 %v1807_v18 }
  0x6d   :  { %1517 = vmatpush3.xpose.msra.mxu0 %v1858_v43  ;;  %1548 = vmatpush3.xpose.msra.mxu1 %v1807_v18 }
  0x6e   :  { %1518 = vmatprep.subr.mxu0 %v1881_v56  ;;  %1549 = vmatprep.subr.mxu1 %v1828_v27 }
  0x71   :  { %1519 = vmatpush3.xpose.msra.mxu0 %v1881_v56  ;;  %1550 = vmatpush3.xpose.msra.mxu1 %v1828_v27 }
  0x72   :  { %1520 = vmatprep.subr.mxu0 %v1903_v2  ;;  %1551 = vmatprep.subr.mxu1 %v1841_v35 }
  0x75   :  { %1521 = vmatpush3.xpose.msra.mxu0 %v1903_v2  ;;  %1552 = vmatpush3.xpose.msra.mxu1 %v1841_v35 }
  0x76   :  { %1522 = vmatprep.subr.mxu0 %v1914_v12  ;;  %1553 = vmatprep.subr.mxu1 %v1863_v46 }
  0x79   :  { %1523 = vmatpush3.xpose.msra.mxu0 %v1914_v12  ;;  %1554 = vmatpush3.xpose.msra.mxu1 %v1863_v46 }
  0x7a   :  { %1524 = vmatprep.subr.mxu0 %v1936_v38  ;;  %1555 = vmatprep.subr.mxu1 %v1872_v51 }
  0x7d   :  { %1525 = vmatpush3.xpose.msra.mxu0 %v1936_v38  ;;  %1556 = vmatpush3.xpose.msra.mxu1 %v1872_v51 }
  0x7e   :  { %1526 = vmatprep.subr.mxu0 %v1949_v49  ;;  %1557 = vmatprep.subr.mxu1 %v1890_v61 }
  0x81   :  { %1527 = vmatpush3.xpose.msra.mxu0 %v1949_v49  ;;  %1558 = vmatpush3.xpose.msra.mxu1 %v1890_v61 }
  0x82   :  { %1528 = vmatprep.subr.mxu0 %v1962_v62  ;;  %1559 = vmatprep.subr.mxu1 %v1910_v7 }
  0x85   :  { %1529 = vmatpush3.xpose.msra.mxu0 %v1962_v62  ;;  %1560 = vmatpush3.xpose.msra.mxu1 %v1910_v7 }
  0x86   :  { %1530 = vmatprep.subr.mxu0 %v1979_v24  ;;  %1561 = vmatprep.subr.mxu1 %v1926_v30 }
  0x89   :  { %1531 = vmatpush3.xpose.msra.mxu0 %v1979_v24  ;;  %1562 = vmatpush3.xpose.msra.mxu1 %v1926_v30 }
  0x8a   :  { %1532 = vmatprep.subr.mxu0 %v1993_v40  ;;  %1563 = vmatprep.subr.mxu1 %v1939_v41 }
  0x8d   :  { %1533 = vmatpush3.xpose.msra.mxu0 %v1993_v40  ;;  %1564 = vmatpush3.xpose.msra.mxu1 %v1939_v41 }
  0x8e   :  { %1534 = vmatprep.subr.mxu0 %v2006_v55  ;;  %1565 = vmatprep.subr.mxu1 %v1952_v53 }
  0x91   :  { %1535 = vmatpush3.xpose.msra.mxu0 %v2006_v55  ;;  %1566 = vmatpush3.xpose.msra.mxu1 %v1952_v53 }
  0x92   :  { %1567 = vmatprep.subr.mxu1 %v1968_v3  ;;  %1574 = vmatprep.subr.mxu0 %v1812_v20 }
  0x94   :  { %1537 = vmatmul.mubr.f32.vlgmr.msra.gmra.mxu0 %v1996_v44 }
  0x95   :  { %1568 = vmatpush3.xpose.msra.mxu1 %v1968_v3  ;;  %1575 = vmatpush3.xpose.msra.mxu0 %v1812_v20 }
  0x96   :  { %1569 = vmatprep.subr.mxu1 %v1984_v28  ;;  %1576 = vmatprep.subr.mxu0 %v1815_v21 }
  0x97   :  { %1606 = vmatprep.mubr.f32.mxu0 %v1883_v58 }
  0x99   :  { %1570 = vmatpush3.xpose.msra.mxu1 %v1984_v28  ;;  %1577 = vmatpush3.xpose.msra.mxu0 %v1815_v21  ;;  %v815_v21 = vsel %vm813_vm2, %v806_v15, 0 }
  0x9a   :  { %1578 = vmatprep.subr.mxu0 %v1818_v22  ;;  %1609 = vmatprep.subr.mxu1 %v1786_v8  ;;  %v2175_v29 = vand.u32 4294901760, %v815_v21 }
  0x9c   :  { %1572 = vmatmul.mubr.f32.vlgmr.msra.gmra.mxu1 %v213_v54 }
  0x9d   :  { %1579 = vmatpush3.xpose.msra.mxu0 %v1818_v22  ;;  %1610 = vmatpush3.xpose.msra.mxu1 %v1786_v8  ;;  %v1747_v8 = vmov 0.0  }
  0x9e   :  { %1580 = vmatprep.subr.mxu0 %v1838_v33  ;;  %1611 = vmatprep.subr.mxu1 %v1788_v9 }
  0x9f   :  { %1641 = vmatprep.mubr.f32.mxu1 %v1883_v58 }
  0xa1   :  { %1581 = vmatpush3.xpose.msra.mxu0 %v1838_v33  ;;  %1612 = vmatpush3.xpose.msra.mxu1 %v1788_v9  ;;  %v807_v9 = vld [vmem:[%s2206_s4] sm:$0x3]  ;;  %s1299_s4 = sshll.u32 %s1749_s3, 4  ;;  %s1300_s4 = int_to_ptr.vmem [resolvable:$true] %s1299_s4 }
  0xa2   :  { %1582 = vmatprep.subr.mxu0 %v1850_v39  ;;  %1613 = vmatprep.subr.mxu1 %v1790_v10  ;;  %s1719_s10 = scalar_lea.vmem %s1300_s4, 32  ;;  %p1724_p6 = scmp.lt.s32.totalorder %s1300_s4, %s1300_s4 }
  0xa3   :  { %810 = vperm.xlu1 %1694, %v807_v9   ;;  %p1720_p5 = scmp.ne.s32.totalorder %s1300_s4, %s1719_s10  ;;  %p1725_p7 = scmp.lt.s32.totalorder %s1719_s10, %s1719_s10 }
  0xa5   :  { %1583 = vmatpush3.xpose.msra.mxu0 %v1850_v39  ;;  %1614 = vmatpush3.xpose.msra.mxu1 %v1790_v10  ;;  %v63_v10 = vpop.permute.xlu0 %62  ;;  %p1726_p8 = por %p1725_p7, %p1724_p6 }
  0xa6   :  { %1584 = vmatprep.subr.mxu0 %v1855_v42  ;;  %1615 = vmatprep.subr.mxu1 %v1793_v13 }
  0xa7   :  { %p1727_p9 = pnand %p1726_p8, %p1720_p5 }
  0xa9   :  { %1585 = vmatpush3.xpose.msra.mxu0 %v1855_v42  ;;  %1616 = vmatpush3.xpose.msra.mxu1 %v1793_v13 }
  0xaa   :  { %1586 = vmatprep.subr.mxu0 %v1875_v52  ;;  %1617 = vmatprep.subr.mxu1 %v1807_v18 }
  0xad   :  { %1587 = vmatpush3.xpose.msra.mxu0 %v1875_v52  ;;  %1618 = vmatpush3.xpose.msra.mxu1 %v1807_v18  ;;  %v58_v18 = vpop.permute.xlu0 %57 }
  0xae   :  { %1588 = vmatprep.subr.mxu0 %v1900_v1  ;;  %1619 = vmatprep.subr.mxu1 %v1828_v27 }
  0xb1   :  { %1589 = vmatpush3.xpose.msra.mxu0 %v1900_v1  ;;  %1620 = vmatpush3.xpose.msra.mxu1 %v1828_v27 }
  0xb2   :  { %1590 = vmatprep.subr.mxu0 %v1923_v25  ;;  %1621 = vmatprep.subr.mxu1 %v1841_v35 }
  0xb5   :  { %1591 = vmatpush3.xpose.msra.mxu0 %v1923_v25  ;;  %1622 = vmatpush3.xpose.msra.mxu1 %v1841_v35 }
  0xb6   :  { %1592 = vmatprep.subr.mxu0 %v1933_v37  ;;  %1623 = vmatprep.subr.mxu1 %v1863_v46 }
  0xb9   :  { %1593 = vmatpush3.xpose.msra.mxu0 %v1933_v37  ;;  %1624 = vmatpush3.xpose.msra.mxu1 %v1863_v46  ;;  %v889_v46 = vsub.f32 %v815_v21, %v2175_v29 }
  0xba   :  { %1594 = vmatprep.subr.mxu0 %v1946_v48  ;;  %1625 = vmatprep.subr.mxu1 %v1872_v51 }
  0xbb   :  { %v890_v1 = vand.u32 4294901760, %v889_v46 }
  0xbd   :  { %1595 = vmatpush3.xpose.msra.mxu0 %v1946_v48  ;;  %1626 = vmatpush3.xpose.msra.mxu1 %v1872_v51  ;;  %v891_v37 = vsub.f32 %v889_v46, %v890_v1 }
  0xbe   :  { %1596 = vmatprep.subr.mxu0 %v1959_v60  ;;  %1627 = vmatprep.subr.mxu1 %v1890_v61 }
  0xc1   :  { %1597 = vmatpush3.xpose.msra.mxu0 %v1959_v60  ;;  %1628 = vmatpush3.xpose.msra.mxu1 %v1890_v61 }
  0xc2   :  { %1598 = vmatprep.subr.mxu0 %v1976_v19  ;;  %1629 = vmatprep.subr.mxu1 %v1910_v7 }
  0xc5   :  { %1599 = vmatpush3.xpose.msra.mxu0 %v1976_v19  ;;  %1630 = vmatpush3.xpose.msra.mxu1 %v1910_v7 }
  0xc6   :  { %1600 = vmatprep.subr.mxu0 %v1990_v34  ;;  %1631 = vmatprep.subr.mxu1 %v1926_v30 }
  0xc9   :  { %1601 = vmatpush3.xpose.msra.mxu0 %v1990_v34  ;;  %1632 = vmatpush3.xpose.msra.mxu1 %v1926_v30 }
  0xca   :  { %1602 = vmatprep.subr.mxu0 %v2003_v50  ;;  %1633 = vmatprep.subr.mxu1 %v1939_v41 }
  0xcd   :  { %1603 = vmatpush3.xpose.msra.mxu0 %v2003_v50  ;;  %1634 = vmatpush3.xpose.msra.mxu1 %v1939_v41 }
  0xce   :  { %1604 = vmatprep.subr.mxu0 %v2014_v0  ;;  %1635 = vmatprep.subr.mxu1 %v1952_v53 }
  0xd1   :  { %1605 = vmatpush3.xpose.msra.mxu0 %v2014_v0  ;;  %1636 = vmatpush3.xpose.msra.mxu1 %v1952_v53  ;;  %v892_v53 = vand.u32 4294901760, %v891_v37 }
  0xd2   :  { %1637 = vmatprep.subr.mxu1 %v1968_v3  ;;  %1644 = vmatprep.subr.mxu0 %v1747_v8 }
  0xd4   :  { %1607 = vmatmul.mubr.f32.vlgmr.msra.gmra.mxu0 %v1981_v26 }
  0xd5   :  { %1638 = vmatpush3.xpose.msra.mxu1 %v1968_v3  ;;  %1648 = vmatprep.mubr.msk.f32.mxu0 %vm1748_vm1, %v1747_v8 }
  0xd6   :  { %1639 = vmatprep.subr.mxu1 %v1984_v28 }
  0xd9   :  { %1640 = vmatpush3.xpose.msra.mxu1 %v1984_v28 }
  0xda   :  { %1651 = vmatprep.subr.mxu1 %v1747_v8 }
  0xdc   :  { %1642 = vmatmul.mubr.f32.vlgmr.msra.gmra.mxu1 %v1981_v26 }
  0xdd   :  { %1655 = vmatprep.mubr.msk.f32.mxu1 %vm1748_vm1, %v1747_v8 }
 0x114   :  { %v1468_v13 = vpop.f32.mrf.mxu0 }
 0x115   :  { %v218_v22 = vadd.f32 %v1468_v13, %v63_v10 }
 0x116   :  { %v207_v16 = vpop.f32.mrf.mxu0 }
 0x117   :  { %v208_v27 = vadd.f32 %v207_v16, %v58_v18 }
 0x11c   :  { %v1503_v17 = vpop.f32.mrf.mxu1 }
 0x11d   :  { %v375_v36 = vadd.f32 %v1503_v17, %v218_v22 }
 0x11e   :  { %v368_v23 = vpop.f32.mrf.mxu1  ;;  %v811_v40 = vpop.permute.xlu1 %810 }
 0x11f   :  { %v369_v42 = vadd.f32 %v368_v23, %v208_v27 }
 0x154   :  { %v1538_v20 = vpop.f32.mrf.mxu0 }
 0x155   :  { %v486_v43 = vadd.f32 %v1538_v20, %v375_v36 }
 0x156   :  { %v478_v33 = vpop.f32.mrf.mxu0 }
 0x157   :  { %v479_v52 = vadd.f32 %v478_v33, %v369_v42 }
 0x15c   :  { %v1573_v35 = vpop.f32.mrf.mxu1 }
 0x15d   :  { %v583_v56 = vadd.f32 %v1573_v35, %v486_v43 }
 0x15e   :  { %v574_v51 = vpop.f32.mrf.mxu1 }
 0x15f   :  { %v575_v59 = vadd.f32 %v574_v51, %v479_v52 }
 0x194   :  { %v1608_v39 = vpop.f32.mrf.mxu0 }
 0x195   :  { %v708_v61 = vadd.f32 %v1608_v39, %v583_v56 }
 0x196   :  { %v701_v58 = vpop.f32.mrf.mxu0 }
 0x197   :  { %v702_v4 = vadd.f32 %v701_v58, %v575_v59 }
 0x19c   :  { %v1643_v2 = vpop.f32.mrf.mxu1 }
 0x19d   :  { %v801_v7 = vadd.f32 %v1643_v2, %v708_v61 }
 0x19e   :  { %v794_v12 = vpop.f32.mrf.mxu1 }
 0x19f   :  { %v805_v25 = vmax.f32 %v801_v7, 0.0  ;;  %v795_v30 = vadd.f32 %v794_v12, %v702_v4 }
 0x1a1   :  { %v819_v38 = vsel %vm817_vm3, %v805_v25, 0  ;;  %v804_v41 = vmax.f32 %v795_v30, 0.0 }
 0x1a2   :  { %v850_v48 = vand.u32 4294901760, %v819_v38 }
 0x1a3   :  { %v853_v49 = vand.u32 4294901760, %v804_v41 }
 0x1a4   :  { %v928_v60 = vsub.f32 %v819_v38, %v850_v48  ;;  %1645 = vmatpush3.msra.mxu0 %v850_v48 }
 0x1a5   :  { %v935_v62 = vsub.f32 %v804_v41, %v853_v49  ;;  %1646 = vmatprep.subr.mxu0 %v1747_v8 }
 0x1a6   :  { %v929_v3 = vand.u32 4294901760, %v928_v60  ;;  %1647 = vmatpush3.msra.mxu0 %v853_v49 }
 0x1a7   :  { %v936_v19 = vand.u32 4294901760, %v935_v62  ;;  %1658 = vmatprep.subr.mxu0 %v1747_v8  ;;  %1649 = vmatmul.mubr.f32.vlgmr.msra.gmra.mxu0 %v892_v53 }
 0x1a8   :  { %1659 = vmatpush3.msra.mxu0 %v928_v60  ;;  %1662 = vmatprep.mubr.msk.f32.mxu0 %vm1748_vm1, %v1747_v8  ;;  %v930_v24 = vsub.f32 %v928_v60, %v929_v3 }
 0x1a9   :  { %v937_v26 = vsub.f32 %v935_v62, %v936_v19  ;;  %1660 = vmatprep.subr.mxu0 %v1747_v8 }
 0x1aa   :  { %1661 = vmatpush3.msra.mxu0 %v935_v62  ;;  %v931_v28 = vand.u32 4294901760, %v930_v24 }
 0x1ab   :  { %1672 = vmatprep.subr.mxu0 %v1747_v8  ;;  %1663 = vmatmul.mubr.f32.vlgmr.msra.gmra.mxu0 %v889_v46  ;;  %v938_v32 = vand.u32 4294901760, %v937_v26 }
 0x1ac   :  { %1652 = vmatpush3.msra.mxu1 %v931_v28  ;;  %1673 = vmatpush3.msra.mxu0 %v929_v3 }
 0x1ad   :  { %1653 = vmatprep.subr.mxu1 %v1747_v8  ;;  %1674 = vmatprep.subr.mxu0 %v1747_v8 }
 0x1ae   :  { %1654 = vmatpush3.msra.mxu1 %v938_v32  ;;  %1675 = vmatpush3.msra.mxu0 %v936_v19 }
 0x1af   :  { %1656 = vmatmul.mubr.f32.vlgmr.msra.gmra.mxu1 %v2175_v29  ;;  %1665 = vmatprep.subr.mxu1 %v1747_v8 }
 0x1b0   :  { %1666 = vmatpush3.msra.mxu1 %v850_v48  ;;  %1669 = vmatprep.mubr.msk.f32.mxu1 %vm1748_vm1, %v1747_v8 }
 0x1b1   :  { %1667 = vmatprep.subr.mxu1 %v1747_v8  ;;  %1676 = vmatprep.mubr.msk.f32.mxu0 %vm1748_vm1, %v1747_v8 }
 0x1b2   :  { %1668 = vmatpush3.msra.mxu1 %v853_v49  ;;  %1677 = vmatmul.mubr.f32.vlgmr.msra.gmra.mxu0 %v2175_v29 }
 0x1b3   :  { %1670 = vmatmul.mubr.f32.vlgmr.msra.gmra.mxu1 %v890_v1  ;;  %1679 = vmatprep.subr.mxu1 %v1747_v8 }
 0x1b4   :  { %1680 = vmatpush3.msra.mxu1 %v850_v48  ;;  %1683 = vmatprep.mubr.msk.f32.mxu1 %vm1748_vm1, %v1747_v8 }
 0x1b5   :  { %1681 = vmatprep.subr.mxu1 %v1747_v8 }
 0x1b6   :  { %1682 = vmatpush3.msra.mxu1 %v853_v49 }
 0x1b7   :  { %1684 = vmatmul.mubr.f32.vlgmr.msra.gmra.mxu1 %v2175_v29 }
 0x267   :  { %v894_v34 = vpop.f32.mrf.mxu0 }
 0x268   :  { %v895_v47 = vadd.f32 %v894_v34, %v811_v40 }
 0x269   :  { %v1650_v44 = vpop.f32.mrf.mxu0 }
 0x26b   :  { %v1051_v45 = vpop.f32.mrf.mxu0 }
 0x26d   :  { %v1664_v50 = vpop.f32.mrf.mxu0 }
 0x26f   :  { %v975_v55 = vpop.f32.mrf.mxu1 }
 0x270   :  { %v976_v54 = vadd.f32 %v975_v55, %v895_v47 }
 0x271   :  { %v1657_v57 = vpop.f32.mrf.mxu1 }
 0x272   :  { %v1052_v63 = vadd.f32 %v1051_v45, %v976_v54  ;;  %v1203_v0 = vpop.f32.mrf.mxu0 }
 0x273   :  { %v1126_v5 = vpop.f32.mrf.mxu1 }
 0x274   :  { %v1127_v6 = vadd.f32 %v1126_v5, %v1052_v63  ;;  %v1678_v11 = vpop.f32.mrf.mxu0 }
 0x275   :  { %v1671_v14 = vpop.f32.mrf.mxu1 }
 0x276   :  { %v1204_v31 = vadd.f32 %v1203_v0, %v1127_v6 }
 0x277   :  { %v1276_v8 = vpop.f32.mrf.mxu1 }
 0x278   :  { %v1277_v9 = vadd.f32 %v1276_v8, %v1204_v31 }
 0x279   :  { %v1685_v10 = vpop.f32.mrf.mxu1 }
 0x27a   :  { %v1281_v13 = vrot.slane %v1277_v9, 7 }
 0x27c   :  { %v1283_v15 = vsub.f32 %v1277_v9, %v1281_v13 }
 0x27e   :  { %v1284_v16 = vsub.f32 0.0, %v1283_v15 }
 0x280   :  { %v1285_v17 = vmul.f32 1.442695, %v1284_v16 }
 0x282   :  { %1695 = vpow2.f32 %v1285_v17 }
 0x28f   :  { %v1696_v18 = vpop.eup %1695 }
 0x290   :  { %v1287_v20 = vadd.f32 1.0, %v1696_v18 }
 0x292   :  { %1697 = vrcp.f32 %v1287_v20 }
 0x29f   :  { %v1698_v21 = vpop.eup %1697 }
 0x2a0   :  { %1292 = vst [vmem:[#allocation5] sm:$0x2] %v1698_v21  ;;  %v1290_v22 = vsub.f32 1.0, %v1698_v21 }
 0x2a2   :  { %1291 = vst [vmem:[#allocation5 - $0x1] sm:$0x2] %v1290_v22 }
 0x2a3   :  { %1730 = shalt.err (!%p1727_p9)
}
 0x2a4   :  { %1302 = dma.vmem_to_hbm [thread:$0]  %s1300_s4, 32, %s2207_s5, [#allocation4]  }
 0x2a5   :  { %1741 = dma.done.wait [#allocation4], 32  }
 0x2a6   :  { %1742 = vsyncadd [#allocation4], 4294967264 }
 0x2a7   :  { %1306 = vsyncpa [#allocation3], 1 }
 0x2a8   :  { %1307 = vsyncpa [#allocation4], 1 }

</bundles_post_ra>
